<compile_context>
chip_gen: v7x
topology: tpu7x:2x2x1
jax: 0.10.0
libtpu: 0.0.40
codegen_flags: <defaults>
</compile_context>

<pallas_src>
import functools

import jax
import jax.numpy as jnp
from jax import lax
from jax.experimental import pallas as pl
from jax.experimental.pallas import tpu as pltpu

P_DROPOUT = 0.1                      # config.attention_dropout_prob
INV_KEEP = 1.0 / (1.0 - P_DROPOUT)   # exact f32 dropout rescale, folded in-kernel


def _attn_kernel(x_ref, y_ref, w_ref, b_ref, m_ref, o_ref, *, S, Sy, d):
    """One grid step == one batch element.

    x_ref: (1, S, d)  f32      y_ref: (1, Sy, d) f32
    w_ref: (d, 4d)    bf16     fused, pre-transposed [W_qy | W_scale | W_k | W_v]
    b_ref: (1, 4d)    f32      fused [b_qy | b_scale | b_k | b_v]
    m_ref: (1, S, Sy) bf16     0/1 dropout keep mask
    o_ref: (1, S, d)  f32
    """
    x = x_ref[0]                       # (S, d)
    y = y_ref[0]                       # (Sy, d)

    # All four live linears as ONE MXU issue: rows = [x; y], weights (d, 4d).
    # At d=32, 4d = 128 exactly fills the lane width; the x-rows-x-kv-cols /
    # y-rows-x-qs-cols cross terms are wasted FLOPs but the MXU is idle anyway.
    rows = jnp.concatenate([x, y], axis=0).astype(jnp.bfloat16)        # (S+Sy, d)
    fused = jnp.dot(rows, w_ref[...],
                    preferred_element_type=jnp.float32) + b_ref[...]   # (S+Sy, 4d) f32

    qy        = fused[:S, 0 * d:1 * d]     # (S,  d)
    inv_scale = fused[:S, 1 * d:2 * d]     # (S,  d)
    k         = fused[S:, 2 * d:3 * d]     # (Sy, d)
    v         = fused[S:, 3 * d:4 * d]     # (Sy, d)

    # qy @ k^T without materializing a transpose: contract on the last dims.
    qk = lax.dot_general(qy.astype(jnp.bfloat16), k.astype(jnp.bfloat16),
                         (((1,), (1,)), ((), ())),
                         preferred_element_type=jnp.float32)           # (S, Sy)

    # qk / inv_scale via EUP reciprocal (Sy == d -> elementwise), f32.
    qk = qk * pl.reciprocal(inv_scale, approx=True)

    # Numerically stable softmax over the last dim (f32 on VPU/EUP).
    qk_max = jnp.max(qk, axis=-1, keepdims=True)
    e = jnp.exp(qk - qk_max)
    denom = jnp.sum(e, axis=-1, keepdims=True)
    # Fold the dropout 1/(1-p) rescale into the cheap (S,1) normalizer.
    probs = e * (pl.reciprocal(denom, approx=True) * INV_KEEP)
    probs = probs * m_ref[0].astype(jnp.float32)                       # 0/1 keep mask

    out = jnp.dot(probs.astype(jnp.bfloat16), v.astype(jnp.bfloat16),
                  preferred_element_type=jnp.float32)                  # (S, d)
    o_ref[0] = out                       # direct per-batch store, no concat


@jax.jit
def model_forward(x, y, w_all, b_all, keep_mask):
    """x: (B, S, d), y: (B, Sy, d) with Sy == d, keep_mask: (B, S, Sy) bf16 0/1."""
    B, S, d = x.shape
    _, Sy, _ = y.shape
    assert Sy == d, "reference module requires y's sequence length == d"

    kernel = functools.partial(_attn_kernel, S=S, Sy=Sy, d=d)

    return pl.pallas_call(
        kernel,
        out_shape=jax.ShapeDtypeStruct((B, S, d), jnp.float32),
        grid=(B,),
        in_specs=[
            pl.BlockSpec((1, S, d),  lambda b: (b, 0, 0)),   # x (per batch)
            pl.BlockSpec((1, Sy, d), lambda b: (b, 0, 0)),   # y (per batch)
            pl.BlockSpec((d, 4 * d), lambda b: (0, 0)),      # fused weights (resident)
            pl.BlockSpec((1, 4 * d), lambda b: (0, 0)),      # fused bias (resident)
            pl.BlockSpec((1, S, Sy), lambda b: (b, 0, 0)),   # dropout keep mask
        ],
        out_specs=pl.BlockSpec((1, S, d), lambda b: (b, 0, 0)),
        compiler_params=pltpu.CompilerParams(
            # Shards the batch axis across both TensorCores on v7x; harmless on
            # single-TC v5e/v6e.
            dimension_semantics=("parallel",)),
    )(x, y, w_all, b_all, keep_mask)


def pack_params(params):
    """Host-side, ONCE (outside the jitted forward): pre-transpose and fuse the
    four live Linear layers (matmul2..5; matmul1 is dead) into a single
    (d, 4d) bf16 weight and (1, 4d) f32 bias, columns = [qy | inv_scale | k | v]."""
    w2, b2, w3, b3, w4, b4, w5, b5 = params
    w_all = jnp.concatenate([w4.T, w5.T, w2.T, w3.T], axis=1).astype(jnp.bfloat16)
    b_all = jnp.concatenate([b4, b5, b2, b3], axis=0)[None, :].astype(jnp.float32)
    return w_all, b_all


def init_params(key, d):
    # torch.nn.Linear default init: U(-1/sqrt(d), 1/sqrt(d)); W is (out, in).
    bound = 1.0 / (d ** 0.5)
    params = []
    for _ in range(4):   # matmul2, matmul3, matmul4, matmul5 (matmul1 is dead)
        key, kw, kb = jax.random.split(key, 3)
        w = jax.random.uniform(kw, (d, d), jnp.float32, -bound, bound)
        b = jax.random.uniform(kb, (d,), jnp.float32, -bound, bound)
        params += [w, b]
    return tuple(params)


if __name__ == "__main__":
    B, S, d = 2, 8, 32       # y's sequence length must equal d (qk.div broadcast)
    Sy = d

    key = jax.random.PRNGKey(0)
    kx, ky, kp, kd = jax.random.split(key, 4)
    x = jax.random.normal(kx, (B, S, d), jnp.float32)
    y = jax.random.normal(ky, (B, Sy, d), jnp.float32)

    params = init_params(kp, d)
    w_all, b_all = pack_params(params)   # done once, outside the jitted forward

    # Training-mode dropout (F.dropout default training=True): keep with prob
    # (1-p); 0/1 mask as bf16 halves the mask DMA, the exact 1/(1-p) rescale is
    # an f32 constant inside the kernel.
    keep_mask = jax.random.bernoulli(kd, 1.0 - P_DROPOUT, (B, S, Sy)).astype(jnp.bfloat16)

    out = model_forward(x, y, w_all, b_all, keep_mask)
    out = jax.block_until_ready(out)

    assert out.shape == (B, S, d)
    assert bool(jnp.all(jnp.isfinite(out)))
    print("KERNEL_OK")
</pallas_src>

<mosaic_0001>
module attributes {stable_mosaic.version = 11 : i64} {
  func.func @_attn_kernel(%arg0: i32, %arg1: memref<1x8x32xf32, #tpu.memory_space<vmem>>, %arg2: memref<1x32x32xf32, #tpu.memory_space<vmem>>, %arg3: memref<32x128xbf16, #tpu.memory_space<vmem>>, %arg4: memref<1x128xf32, #tpu.memory_space<vmem>>, %arg5: memref<1x8x32xbf16, #tpu.memory_space<vmem>>, %arg6: memref<1x8x32xf32, #tpu.memory_space<vmem>>) attributes {dimension_semantics = [#tpu.dimension_semantics<parallel>], iteration_bounds = array<i64: 2>, scalar_prefetch = 0 : i64, scratch_operands = 0 : i64, tpu.core_type = #tpu.core_type<tc>, window_params = [{transform_indices = @transform_0, window_bounds = array<i64: 1, 8, 32>}, {transform_indices = @transform_1, window_bounds = array<i64: 1, 32, 32>}, {pipeline_mode = #tpu.pipeline_mode<synchronous>, transform_indices = @transform_2, window_bounds = array<i64: 32, 128>}, {pipeline_mode = #tpu.pipeline_mode<synchronous>, transform_indices = @transform_3, window_bounds = array<i64: 1, 128>}, {transform_indices = @transform_4, window_bounds = array<i64: 1, 8, 32>}, {transform_indices = @transform_5, window_bounds = array<i64: 1, 8, 32>}]} {
    %c0 = arith.constant 0 : index
    %c0_0 = arith.constant 0 : index
    %c0_1 = arith.constant 0 : index
    %0 = vector.load %arg1[%c0, %c0_0, %c0_1] : memref<1x8x32xf32, #tpu.memory_space<vmem>>, vector<1x8x32xf32>
    %1 = vector.shape_cast %0 : vector<1x8x32xf32> to vector<8x32xf32>
    %c0_2 = arith.constant 0 : index
    %c0_3 = arith.constant 0 : index
    %c0_4 = arith.constant 0 : index
    %2 = vector.load %arg2[%c0_2, %c0_3, %c0_4] : memref<1x32x32xf32, #tpu.memory_space<vmem>>, vector<1x32x32xf32>
    %3 = vector.shape_cast %2 : vector<1x32x32xf32> to vector<32x32xf32>
    %4 = tpu.concatenate %1, %3 in 0 : vector<8x32xf32>, vector<32x32xf32> -> vector<40x32xf32>
    %5 = arith.truncf %4 : vector<40x32xf32> to vector<40x32xbf16>
    %c0_5 = arith.constant 0 : index
    %c0_6 = arith.constant 0 : index
    %6 = vector.load %arg3[%c0_5, %c0_6] : memref<32x128xbf16, #tpu.memory_space<vmem>>, vector<32x128xbf16>
    %cst = arith.constant dense<0.000000e+00> : vector<40x128xf32>
    %7 = tpu.matmul %5, %6, %cst {dimension_numbers = #tpu.dot_dimension_numbers<[1], [0], [0], [1], [0, 0, 1, 1], [], []>} : vector<40x32xbf16>, vector<32x128xbf16>, vector<40x128xf32> -> vector<40x128xf32>
    %c0_7 = arith.constant 0 : index
    %c0_8 = arith.constant 0 : index
    %8 = vector.load %arg4[%c0_7, %c0_8] : memref<1x128xf32, #tpu.memory_space<vmem>>, vector<1x128xf32>
    %9 = vector.broadcast %8 : vector<1x128xf32> to vector<40x128xf32>
    %10 = arith.addf %7, %9 : vector<40x128xf32>
    %11 = vector.extract_strided_slice %10 {offsets = [0, 0], sizes = [8, 32], strides = [1, 1]} : vector<40x128xf32> to vector<8x32xf32>
    %12 = vector.extract_strided_slice %10 {offsets = [0, 32], sizes = [8, 32], strides = [1, 1]} : vector<40x128xf32> to vector<8x32xf32>
    %13 = vector.extract_strided_slice %10 {offsets = [8, 64], sizes = [32, 32], strides = [1, 1]} : vector<40x128xf32> to vector<32x32xf32>
    %14 = vector.extract_strided_slice %10 {offsets = [8, 96], sizes = [32, 32], strides = [1, 1]} : vector<40x128xf32> to vector<32x32xf32>
    %15 = arith.truncf %11 : vector<8x32xf32> to vector<8x32xbf16>
    %16 = arith.truncf %13 : vector<32x32xf32> to vector<32x32xbf16>
    %cst_9 = arith.constant dense<0.000000e+00> : vector<8x32xf32>
    %17 = tpu.matmul %15, %16, %cst_9 {dimension_numbers = #tpu.dot_dimension_numbers<[1], [1], [0], [0], [0, 0, 1, 0], [], []>} : vector<8x32xbf16>, vector<32x32xbf16>, vector<8x32xf32> -> vector<8x32xf32>
    %18 = tpu.reciprocal %12 {approx = true} : vector<8x32xf32> -> vector<8x32xf32>
    %19 = arith.mulf %17, %18 : vector<8x32xf32>
    %cst_10 = arith.constant dense<0xFF800000> : vector<8xf32>
    %20 = vector.multi_reduction <maximumf>, %19, %cst_10 [1] : vector<8x32xf32> to vector<8xf32>
    %21 = vector.shape_cast %20 : vector<8xf32> to vector<8x1xf32>
    %22 = vector.broadcast %21 : vector<8x1xf32> to vector<8x32xf32>
    %23 = arith.subf %19, %22 : vector<8x32xf32>
    %24 = math.exp %23 : vector<8x32xf32>
    %cst_11 = arith.constant dense<0.000000e+00> : vector<8xf32>
    %25 = vector.multi_reduction <add>, %24, %cst_11 [1] : vector<8x32xf32> to vector<8xf32>
    %26 = vector.shape_cast %25 : vector<8xf32> to vector<8x1xf32>
    %27 = tpu.reciprocal %26 {approx = true} : vector<8x1xf32> -> vector<8x1xf32>
    %cst_12 = arith.constant 1.11111116 : f32
    %28 = vector.broadcast %cst_12 : f32 to vector<8x1xf32>
    %29 = arith.mulf %27, %28 : vector<8x1xf32>
    %30 = vector.broadcast %29 : vector<8x1xf32> to vector<8x32xf32>
    %31 = arith.mulf %24, %30 : vector<8x32xf32>
    %c0_13 = arith.constant 0 : index
    %c0_14 = arith.constant 0 : index
    %c0_15 = arith.constant 0 : index
    %32 = vector.load %arg5[%c0_13, %c0_14, %c0_15] : memref<1x8x32xbf16, #tpu.memory_space<vmem>>, vector<1x8x32xbf16>
    %33 = vector.shape_cast %32 : vector<1x8x32xbf16> to vector<8x32xbf16>
    %34 = arith.extf %33 : vector<8x32xbf16> to vector<8x32xf32>
    %35 = arith.mulf %31, %34 : vector<8x32xf32>
    %36 = arith.truncf %35 : vector<8x32xf32> to vector<8x32xbf16>
    %37 = arith.truncf %14 : vector<32x32xf32> to vector<32x32xbf16>
    %cst_16 = arith.constant dense<0.000000e+00> : vector<8x32xf32>
    %38 = tpu.matmul %36, %37, %cst_16 {dimension_numbers = #tpu.dot_dimension_numbers<[1], [0], [0], [1], [0, 0, 1, 1], [], []>} : vector<8x32xbf16>, vector<32x32xbf16>, vector<8x32xf32> -> vector<8x32xf32>
    %c0_17 = arith.constant 0 : index
    %c0_18 = arith.constant 0 : index
    %c0_19 = arith.constant 0 : index
    %39 = vector.load %arg6[%c0_17, %c0_18, %c0_19] : memref<1x8x32xf32, #tpu.memory_space<vmem>>, vector<1x8x32xf32>
    %40 = vector.shape_cast %39 : vector<1x8x32xf32> to vector<8x32xf32>
    %41 = vector.shape_cast %38 : vector<8x32xf32> to vector<1x8x32xf32>
    tpu.vector_store %arg6[%c0_17, %c0_18, %c0_19], %41 {strides = array<i32>} : memref<1x8x32xf32, #tpu.memory_space<vmem>>, vector<1x8x32xf32>,
    return
  }
  func.func @transform_0(%arg0: i32) -> (i32, i32, i32) {
    %c0_i32 = arith.constant 0 : i32
    %c0_i32_0 = arith.constant 0 : i32
    %c0_i32_1 = arith.constant 0 : i32
    return %arg0, %c0_i32, %c0_i32_0 : i32, i32, i32
  }
  func.func @transform_1(%arg0: i32) -> (i32, i32, i32) {
    %c0_i32 = arith.constant 0 : i32
    %c0_i32_0 = arith.constant 0 : i32
    %c0_i32_1 = arith.constant 0 : i32
    return %arg0, %c0_i32, %c0_i32_0 : i32, i32, i32
  }
  func.func @transform_2(%arg0: i32) -> (i32, i32) {
    %c0_i32 = arith.constant 0 : i32
    %c0_i32_0 = arith.constant 0 : i32
    %c0_i32_1 = arith.constant 0 : i32
    return %c0_i32, %c0_i32_0 : i32, i32
  }
  func.func @transform_3(%arg0: i32) -> (i32, i32) {
    %c0_i32 = arith.constant 0 : i32
    %c0_i32_0 = arith.constant 0 : i32
    %c0_i32_1 = arith.constant 0 : i32
    return %c0_i32, %c0_i32_0 : i32, i32
  }
  func.func @transform_4(%arg0: i32) -> (i32, i32, i32) {
    %c0_i32 = arith.constant 0 : i32
    %c0_i32_0 = arith.constant 0 : i32
    %c0_i32_1 = arith.constant 0 : i32
    return %arg0, %c0_i32, %c0_i32_0 : i32, i32, i32
  }
  func.func @transform_5(%arg0: i32) -> (i32, i32, i32) {
    %c0_i32 = arith.constant 0 : i32
    %c0_i32_0 = arith.constant 0 : i32
    %c0_i32_1 = arith.constant 0 : i32
    return %arg0, %c0_i32, %c0_i32_0 : i32, i32, i32
  }
}

</mosaic_0001>

<bundles_post_ra>
// kernel: model_forward.1
= control target key start
LH: loop header
LB: loop body
LE: loop exit
PB: predicated region body
PF: predicated region fallthrough
CT: control target
= control target key end

     0   :  { %s1306_s0 = inlined_call_operand.hbm [shape: f32[2,8,32], index: 0, kind: input, shape index: {}]   ;;  %s1307_s1 = inlined_call_operand.hbm [shape: f32[2,32,32], index: 1, kind: input, shape index: {}]   ;;  %s1308_s2 = inlined_call_operand.hbm [shape: bf16[32,128], index: 2, kind: input, shape index: {}]   ;;  %s1309_s3 = inlined_call_operand.vmem [shape: f32[1,128], index: 3, kind: input, shape index: {}]   ;;  %s1310_s4 = inlined_call_operand.vmem [shape: bf16[2,8,32], index: 4, kind: input, shape index: {}]   ;;  %s1311_s5 = inlined_call_operand.hbm [shape: f32[2,8,32], index: 5, kind: output, shape index: {}]  }
   0x1   :  { %1315 = sst [smem:[#allocation13_spill]] %s1306_s0 }
   0x2   :  { %10 = vsyncpa [#allocation3], 0 }
   0x3   :  { %12 = vsyncpa [#allocation3 + $0x1], 0 }
   0x4   :  { %13 = vsyncpa [#allocation6], 0 }
   0x5   :  { %15 = vsyncpa [#allocation6 + $0x1], 0 }
   0x6   :  { %16 = vsyncpa [#allocation4], 0 }
   0x7   :  { %18 = vsyncpa [#allocation4 + $0x1], 0  ;;  %s1024_s18 = smov 0   ;;  %s1026_s19 = smov 0  }
   0x8   :  { %s1028_s20 = smov 0   ;;  %s1030_s21 = smov 0  }
   0x9 LB: > { %s1045_s22 = sadd.s32 4294967295, %s979_s21   ;;  %s667_s23 = sadd.s32 4294967294, %s979_s21   ;;  %s979_s21 = sphi %s1030_s21, %s1333_s21   ;;  %s975_s20 = sphi %s1028_s20, %s1332_s20   ;;  %s971_s19 = sphi %s1026_s19, %s1331_s19   ;;  %s967_s18 = sphi %s1024_s18, %s1330_s18  }
   0xa   : > { %p44_p0 = scmp.ne.s32.totalorder %s971_s19, %s967_s18  ;;  %p1312_p1 = scmp.eq.s32.totalorder %s1045_s22, 0 }
   0xb   : > { %p168_p3 = scmp.eq.s32.totalorder %s667_s23, 1  ;;  %p668_p5 = scmp.ge.s32.totalorder %s979_s21, 1 }
   0xc   : > { %p1054_p4 = por %p1312_p1, %p44_p0  ;;  %p175_p7 = scmp.lt.s32.totalorder %s979_s21, 3 }
   0xd   : > { %p1059_p6 = por %p168_p3, %p44_p0  ;;  %s981_s27 = smov [#allocation7]  }
   0xe   : > { %s1316_s24 = scalar_select %p1054_p4, 1, 0 }
   0xf   : > { %s1317_s25 = scalar_select %p1059_p6, 1, 0 }
  0x10   : > { %p1064_p8 = pnand %p668_p5, %p175_p7  ;;  %s187_s28 = sshll.u32 %s981_s27, 4  ;;  %s1068_s28 = int_to_ptr.vmem [resolvable:$true] %s187_s28 }
  0x11   : > { %s1080_s30 = sadd.s32 1, %s979_s21   ;;  %s31_s6 = sadd.s32 1, %s975_s20 }
  0x12   : > { %s1318_s26 = scalar_select %p1064_p8, 1, 0 }
  0x13   : > { %p748_p9 = pneg %p1064_p8  ;;  %s28_s7 = ssub.s32 %s979_s21, %s1080_s30 }
  0x14   : > { %s817_s10 = scalar_lea.hbm %s1308_s2, 256 }
  0x15   : > { %p1075_p11 = pnand %p748_p9, %p1312_p1  ;;  %p818_p12 = scmp.ne.s32.totalorder %s1308_s2, %s817_s10 }
  0x16   : > { %p824_p5 = scmp.lt.u32.totalorder %s817_s10, %s1308_s2 }
  0x17   : > { %p819_p13 = pneg %p1075_p11 }
  0x19   : > { %p820_p0 = pnand %p819_p13, %p818_p12 }
  0x1b   : > { %p821_p3 = pneg %p820_p0 }
  0x1d   : > { %p826_p7 = pnand %p824_p5, %p821_p3 }
  0x1f   : > { %829 = shalt.err (!%p826_p7)
}
  0x20   : > { %s830_s15 = scalar_lea.vmem %s1068_s28, 256  ;;  %p838_p2 = scmp.lt.s32.totalorder %s1068_s28, %s1068_s28 }
  0x21   : > { %p831_p9 = scmp.ne.s32.totalorder %s1068_s28, %s830_s15  ;;  %p839_p6 = scmp.lt.s32.totalorder %s830_s15, %s830_s15 }
  0x23   : > { %p833_p10 = pnand %p831_p9, %p819_p13  ;;  %p840_p4 = por %p839_p6, %p838_p2 }
  0x25   : > { %p834_p1 = pneg %p833_p10 }
  0x27   : > { %p841_p8 = pnand %p840_p4, %p834_p1 }
  0x29   : > { %844 = shalt.err (!%p841_p8)
}
  0x2a   : > { %s982_s16 = smov 64   ;;  %s983_s17 = smov 4  }
  0x2b   : > { %751 = dma.hbm_to_vmem [thread:$0]  (!%p1075_p11), %s1308_s2, 256, %s1068_s28, [#allocation6], %s982_s16, %s982_s16, %s983_s17  }
  0x2c   : > { %p29_p2 = scmp.eq.s32.totalorder %s28_s7, 0  ;;  %p38_p1 = scmp.ne.s32.totalorder %s975_s20, %s971_s19 }
  0x2d   : > { %p39_p4 = scmp.eq.s32.totalorder %s979_s21, 0  ;;  %p764_p6 = scmp.lt.s32.totalorder %s979_s21, 2 }
  0x2e   : > { %s1111_s8 = scalar_select %p29_p2, %s975_s20, %s31_s6  }
  0x2f   : > { %p40_p8 = por %p39_p4, %p38_p1  ;;  %p1320_p10 = scmp.eq.s32.totalorder %s1045_s22, 1 }
  0x30   : > { %s1120_s10 = sand.u32 1, %s975_s20   ;;  %s672_s29 = sshll.u32 %s979_s21, 7 }
  0x31   : > { %p1115_p12 = por %p1320_p10, %p38_p1  ;;  %s671_s11 = sshll.u32 %s1120_s10, 3 }
  0x32   : > { %s1322_s0 = sld [smem:[#allocation13_spill]]  ;;  %s208_s6 = scalar_lea.vmem [#allocation2], %s671_s11 }
  0x33   : > { %s215_s13 = sshll.u32 %s208_s6, 4  ;;  %p1129_p11 = pnand %p764_p6, %p40_p8  ;;  %s1133_s13 = int_to_ptr.vmem [resolvable:$true] %s215_s13 }
  0x34   : > { %s673_s15 = sshll.u32 %s1120_s10, 5  ;;  %s205_s16 = scalar_lea.sflag [#allocation3], %s1120_s10 }
  0x35   : > { %p847_p0 = pneg %p1129_p11 }
  0x38   : > { %s1127_s12 = scalar_lea.hbm %s1322_s0, %s672_s29  ;;  %s850_s29 = scalar_lea.hbm %s1322_s0, 256 }
  0x39   : > { %s845_s17 = scalar_lea.hbm %s1127_s12, 128  ;;  %p851_p7 = scmp.lt.u32.totalorder %s1127_s12, %s1322_s0 }
  0x3a   : > { %p846_p13 = scmp.ne.s32.totalorder %s1127_s12, %s845_s17  ;;  %p852_p9 = scmp.lt.u32.totalorder %s850_s29, %s845_s17 }
  0x3b   : > { %p854_p1 = scmp.lt.u32.totalorder %s845_s17, %s1127_s12 }
  0x3c   : > { %p848_p3 = pnand %p847_p0, %p846_p13  ;;  %p853_p2 = por %p852_p9, %p851_p7 }
  0x3e   : > { %p849_p5 = pneg %p848_p3  ;;  %p855_p4 = por %p854_p1, %p853_p2 }
  0x40   : > { %p856_p6 = pnand %p855_p4, %p849_p5 }
  0x42   : > { %859 = shalt.err (!%p856_p6)
}
  0x43   : > { %s860_s7 = scalar_lea.vmem %s1133_s13, 128  ;;  %s984_s6 = smov [#allocation2]  }
  0x44   : > { %p861_p8 = scmp.ne.s32.totalorder %s1133_s13, %s860_s7  ;;  %s865_s23 = sshll.u32 %s984_s6, 4  ;;  %s866_s23 = int_to_ptr.vmem [resolvable:$false] %s865_s23 }
  0x45   : > { %s867_s27 = scalar_lea.vmem %s866_s23, 256  ;;  %p868_p3 = scmp.lt.s32.totalorder %s1133_s13, %s866_s23 }
  0x46   : > { %p863_p10 = pnand %p861_p8, %p847_p0  ;;  %p869_p7 = scmp.lt.s32.totalorder %s867_s27, %s860_s7 }
  0x48   : > { %p864_p13 = pneg %p863_p10  ;;  %p870_p9 = por %p869_p7, %p868_p3 }
  0x4a   : > { %p871_p2 = pnand %p870_p9, %p864_p13 }
  0x4c   : > { %874 = shalt.err (!%p871_p2)
}
  0x4d   : > { %755 = dma.hbm_to_vmem [thread:$0]  (!%p1129_p11), %s1127_s12, 128, %s1133_s13, %s205_s16  }
  0x4e   : > { %s226_s17 = scalar_lea.vmem [#allocation5], %s673_s15  ;;  %s222_s11 = sand.u32 1, %s979_s21  }
  0x4f   : > { %s233_s29 = sshll.u32 %s226_s17, 4  ;;  %s694_s28 = sshll.u32 %s979_s21, 9  ;;  %s1165_s29 = int_to_ptr.vmem [resolvable:$true] %s233_s29 }
  0x50   : > { %s1171_s23 = scalar_lea.hbm %s1307_s1, %s694_s28  ;;  %s1173_s27 = scalar_lea.sflag [#allocation6], %s222_s11 }
  0x51   : > { %s875_s0 = scalar_lea.hbm %s1171_s23, 512  ;;  %s880_s13 = scalar_lea.hbm %s1307_s1, 1024 }
  0x52   : > { %p876_p5 = scmp.ne.s32.totalorder %s1171_s23, %s875_s0  ;;  %p881_p6 = scmp.lt.u32.totalorder %s1171_s23, %s1307_s1 }
  0x53   : > { %p882_p8 = scmp.lt.u32.totalorder %s880_s13, %s875_s0  ;;  %p884_p13 = scmp.lt.u32.totalorder %s875_s0, %s1171_s23 }
  0x54   : > { %p878_p1 = pnand %p876_p5, %p847_p0 }
  0x55   : > { %p883_p10 = por %p882_p8, %p881_p6 }
  0x56   : > { %p879_p4 = pneg %p878_p1 }
  0x57   : > { %p885_p3 = por %p884_p13, %p883_p10 }
  0x59   : > { %p886_p7 = pnand %p885_p3, %p879_p4 }
  0x5b   : > { %889 = shalt.err (!%p886_p7)
}
  0x5c   : > { %s890_s17 = scalar_lea.vmem %s1165_s29, 512  ;;  %s985_s11 = smov [#allocation5]  }
  0x5d   : > { %p891_p9 = scmp.ne.s32.totalorder %s1165_s29, %s890_s17  ;;  %s895_s28 = sshll.u32 %s985_s11, 4  ;;  %s896_s28 = int_to_ptr.vmem [resolvable:$false] %s895_s28 }
  0x5e   : > { %s897_s7 = scalar_lea.vmem %s896_s28, 1024  ;;  %p898_p1 = scmp.lt.s32.totalorder %s1165_s29, %s896_s28 }
  0x5f   : > { %p893_p2 = pnand %p891_p9, %p847_p0  ;;  %p899_p6 = scmp.lt.s32.totalorder %s897_s7, %s890_s17 }
  0x61   : > { %p894_p5 = pneg %p893_p2  ;;  %p900_p8 = por %p899_p6, %p898_p1 }
  0x63   : > { %p901_p10 = pnand %p900_p8, %p894_p5 }
  0x65   : > { %904 = shalt.err (!%p901_p10)
}
  0x66   : > { %s986_s0 = smov 128   ;;  %s987_s6 = smov 8  }
  0x67   : > { %758 = dma.hbm_to_vmem [thread:$0]  (!%p1129_p11), %s1171_s23, 512, %s1165_s29, %s1173_s27, %s986_s0, %s986_s0, %s987_s6  }
  0x68   : > { %p1324_p0 = scmp.ne.s32.totalorder %s1318_s26, 0 }
  0x69   : > { %s1202_s10 = sand.u32 (!%p1324_p0), 1, %s971_s19   ;;  %p1325_p4 = scmp.ne.s32.totalorder (!%p1324_p0), %s1316_s24, 0 }
  0x6a   : > { %252 = sbr.rel (%p1324_p0) target bundleno = 1246 (0x4de), region = 40  ;;  %s677_s12 = sshll.u32 (!%p1324_p0), %s1202_s10, 3 }
  0x6b   : > { %s255_s13 = scalar_lea.sflag (!%p1324_p0), [#allocation3], %s1202_s10  ;;  %s258_s15 = scalar_lea.vmem (!%p1324_p0), [#allocation2], %s677_s12 }
  0x71   : > { %950 = dma.done.wait (%p1325_p4), %s255_s13, 128  }
  0x72   : > { %952 = vsyncadd (%p1325_p4), %s255_s13, 4294967168  ;;  %s263_s26 = sand.u32 1, %s1045_s22   ;;  %s678_s14 = sshll.u32 %s1202_s10, 5 }
  0x73   : > { %s264_s29 = scalar_lea.sflag [#allocation6], %s263_s26  ;;  %s267_s23 = scalar_lea.vmem [#allocation5], %s678_s14 }
  0x74   : > { %954 = dma.done.wait (%p1325_p4), %s264_s29, 512  }
  0x75   : > { %956 = vsyncadd (%p1325_p4), %s264_s29, 4294966784  ;;  %p1326_p11 = scmp.eq.s32.totalorder %s1045_s22, 0 }
  0x77   : > { %958 = dma.done.wait (%p1326_p11), [#allocation6], 256   ;;  %p1327_p13 = pmov %p1326_p11 }
  0x78   : > { %v988_v0 = vmov 0.0   ;;  %vm989_vm0 = vmmov 0   ;;  %v809_v1 = vld [vmem:[#allocation7] sm:$0xff]   ;;  %v810_v2 = vld [vmem:[#allocation7 + $0x8] sm:$0xff]   ;;  %v312_v3 = vld [vmem:[%s258_s15] sm:$0xff]  ;;  %vm343_vm1 = vcmask 261120  }
  0x79   : > { %960 = vsyncadd (%p1327_p13), [#allocation6], 4294967040  ;;  %706 = vmatprep.subr.bf16.mxu0 %v988_v0  ;;  %710 = vmatprep.mubr.msk.bf16.mxu0 %vm989_vm0, %v988_v0  ;;  %v313_v4 = vld [vmem:[%s267_s23] sm:$0xff]  ;;  %v314_v6 = vld [vmem:[%s267_s23 + $0x8] sm:$0xff]  ;;  %s990_s16 = smov 64   ;;  %s991_s17 = smov 96  }
  0x7a   : > { %722 = vmatprep.subr.bf16.mxu1 %v988_v0  ;;  %726 = vmatprep.mubr.msk.bf16.mxu1 %vm989_vm0, %v988_v0  ;;  %v317_v5 = vpack.c.bf16 %v313_v4, %v312_v3  ;;  %v315_v7 = vld [vmem:[%s267_s23 + $0x10] sm:$0xff]  ;;  %v316_v9 = vld [vmem:[%s267_s23 + $0x18] sm:$0xff]  ;;  %s992_s11 = smov 32   ;;  %p307_p3 = scmp.lt.s32.totalorder %s1045_s22, 1 }
  0x7b   : > { %707 = vmatpush3.bf16.msra.mxu0 %v809_v1  ;;  %v318_v8 = vpack.c.bf16 %v315_v7, %v314_v6  ;;  %v319_v10 = vpack.c.bf16 %v316_v9, %v316_v9  ;;  %v682_v11 = vld [vmem:[%s1309_s3] ss:$0 sm:$0xff]  ;;  %s691_s15 = sshll.u32 %s1045_s22, 7  ;;  %s306_s26 = scalar_lea.vmem [#allocation8], %s677_s12 }
  0x7c   : > { %708 = vmatprep.subr.bf16.mxu0 %v988_v0  ;;  %s308_s28 = scalar_select %p307_p3, %s1045_s22, 1 }
  0x7d   : > { %s553_s14 = sshll.u32 %s306_s26, 4  ;;  %s1261_s24 = scalar_lea.hbm %s1311_s5, %s691_s15  ;;  %s1263_s14 = int_to_ptr.vmem [resolvable:$true] %s553_s14 }
  0x7e   : > { %s681_s7 = sshll.u32 %s308_s28, 2  ;;  %s540_s27 = scalar_lea.sflag [#allocation4], %s1202_s10 }
  0x7f   : > { %709 = vmatpush3.bf16.msra.mxu0 %v810_v2  ;;  %s310_s13 = scalar_lea.vmem %s1310_s4, %s681_s7  ;;  %s905_s22 = scalar_lea.vmem %s1263_s14, 128 }
  0x80   : > { %v485_v52 = vld [vmem:[%s310_s13] sm:$0xf]  ;;  %p906_p7 = scmp.ne.s32.totalorder %s1263_s14, %s905_s22  ;;  %s993_s12 = smov [#allocation8]  }
  0x81   : > { %v486_v54 = vunpack.c.l.bf16 %v485_v52 }
  0x82   : > { %711 = vmatmul.mubr.msk.bf16.vlgmr.msra.gmra.mrb[0].mxu0 %vm343_vm1, %v317_v5  ;;  %p907_p9 = pnand %p906_p7, %p1115_p12 }
  0x83   : > { %714 = vmatprep.mubr.msk.bf16.mxu0 %vm989_vm0, %v988_v0 }
  0x84   : > { %p908_p2 = pneg %p907_p9 }
  0x8a   : > { %715 = vmatmul.mubr.msk.bf16.gmra.mrb[4].mxu0 %vm343_vm1, %v318_v8 }
  0x8b   : > { %718 = vmatprep.mubr.msk.bf16.mxu0 %vm989_vm0, %v988_v0 }
  0x92   : > { %719 = vmatmul.mubr.msk.bf16.gmra.mrb[8].mxu0 %vm343_vm1, %v319_v10 }
 0x155   : > { %v387_v12 = vpop.f32.mrb[0].mxu0 }
 0x156   : > { %v388_v13 = vadd.f32 %v682_v11, %v387_v12  ;;  %v712_v14 = vpop.f32.mrb[1].mxu0 }
 0x157   : > { %v390_v15 = vpop.f32.mrb[2].mxu0 }
 0x158   : > { %811 = vrcp.f32 %v388_v13  ;;  %v713_v16 = vpop.f32.mrb[3].mxu0  ;;  %v391_v18 = vadd.f32 %v682_v11, %v390_v15  ;;  %v409_v36 = vpack.c.bf16 %v388_v13, %v388_v13 }
 0x15d   : > { %v395_v17 = vpop.f32.mrb[4].mxu0 }
 0x15e   : > { %v396_v19 = vadd.f32 %v682_v11, %v395_v17  ;;  %v716_v20 = vpop.f32.mrb[5].mxu0 }
 0x15f   : > { %v398_v21 = vpop.f32.mrb[6].mxu0 }
 0x160   : > { %v717_v22 = vpop.f32.mrb[7].mxu0  ;;  %v410_v23 = vpack.c.bf16 %v396_v19, %v391_v18  ;;  %v399_v26 = vadd.f32 %v682_v11, %v398_v21 }
 0x162   : > { %v812_v24 = vpop.eup %811  ;;  %414 = vrot.lane.b32.xlu0 %v410_v23, %s990_s16 }
 0x163   : > { %469 = vrot.lane.b32.xlu1 %v812_v24, %s991_s17 }
 0x165   : > { %v403_v25 = vpop.f32.mrb[8].mxu0 }
 0x166   : > { %v404_v27 = vadd.f32 %v682_v11, %v403_v25  ;;  %v720_v28 = vpop.f32.mrb[9].mxu0 }
 0x167   : > { %v406_v29 = vpop.f32.mrb[10].mxu0 }
 0x168   : > { %v411_v30 = vpack.c.bf16 %v404_v27, %v399_v26  ;;  %v721_v31 = vpop.f32.mrb[11].mxu0 }
 0x16a   : > { %416 = vrot.lane.b32.xlu0 %v411_v30, %s990_s16  ;;  %s909_s16 = sshll.u32 %s993_s12, 4  ;;  %s910_s16 = int_to_ptr.vmem [resolvable:$false] %s909_s16 }
 0x16b   : > { %s911_s17 = scalar_lea.vmem %s910_s16, 256  ;;  %p912_p5 = scmp.lt.s32.totalorder %s1263_s14, %s910_s16 }
 0x16c   : > { %p913_p1 = scmp.lt.s32.totalorder %s911_s17, %s905_s22 }
 0x16e   : > { %p914_p6 = por %p913_p1, %p912_p5 }
 0x170   : > { %p915_p8 = pnand %p914_p6, %p908_p2 }
 0x1d4   : > { %v415_v32 = vpop.permute.xlu0 %414 }
 0x1d5   : > { %v422_v33 = vsel %vm343_vm1, %v415_v32, 0  ;;  %v470_v37 = vpop.permute.xlu1 %469 }
 0x1d6   : > { %723 = vmatpush3.bf16.xpose.msra.mxu1 %v422_v33 }
 0x1d7   : > { %724 = vmatprep.subr.bf16.mxu1 %v988_v0 }
 0x1dc   : > { %v417_v34 = vpop.permute.xlu0 %416 }
 0x1dd   : > { %v425_v35 = vsel %vm343_vm1, %v417_v34, 0 }
 0x1de   : > { %725 = vmatpush3.bf16.xpose.msra.mxu1 %v425_v35 }
 0x1df   : > { %730 = vmatprep.subr.bf16.mxu1 %v988_v0 }
 0x1e5   : > { %727 = vmatmul.mubr.msk.bf16.vlgmr.msra.gmra.mrb[0].mxu1 %vm343_vm1, %v409_v36 }
 0x1e6   : > { %734 = vmatprep.mubr.msk.bf16.mxu1 %vm989_vm0, %v988_v0 }
 0x2b8   : > { %v461_v38 = vpop.f32.mrb[0].mxu1 }
 0x2b9   : > { %v472_v39 = vmul.f32 %v470_v37, %v461_v38  ;;  %v728_v40 = vpop.f32.mrb[1].mxu1 }
 0x2ba   : > { %v464_v41 = vpop.f32.mrb[2].mxu1 }
 0x2bb   : > { %v729_v42 = vpop.f32.mrb[3].mxu1  ;;  %v473_v43 = vsel %vm343_vm1, %v472_v39, -inf }
 0x2bc   : > { %474 = vmax.xlane.f32.xlu1 %v473_v43 }
 0x2cd   : > { %491 = vrot.lane.b32.xlu1 %v411_v30, %s992_s11 }
 0x349   : > { %v475_v44 = vpop.xlane.xlu1 %474 }
 0x34a   : > { %v476_v45 = vsub.f32 %v472_v39, %v475_v44 }
 0x34c   : > { %v477_v46 = vmul.f32 1.442695, %v476_v45 }
 0x34d   : > { %v492_v51 = vpop.permute.xlu1 %491 }
 0x34e   : > { %813 = vpow2.f32 %v477_v46 }
 0x358   : > { %v814_v47 = vpop.eup %813 }
 0x359   : > { %v479_v48 = vsel %vm343_vm1, %v814_v47, 0.0 }
 0x35a   : > { %480 = vadd.xlane.f32.xlu0 %v479_v48 }
 0x370   : > { %489 = vrot.lane.b32.xlu0 %v410_v23, %s992_s11 }
 0x3e7   : > { %v481_v49 = vpop.xlane.xlu0 %480 }
 0x3e8   : > { %815 = vrcp.f32 %v481_v49 }
 0x3eb   : > { %v490_v50 = vpop.permute.xlu0 %489 }
 0x3ec   : > { %731 = vmatpush3.bf16.msra.mxu1 %v490_v50 }
 0x3ed   : > { %732 = vmatprep.subr.bf16.mxu1 %v988_v0 }
 0x3f0   : > { %733 = vmatpush3.bf16.msra.mxu1 %v492_v51 }
 0x3f2   : > { %v816_v53 = vpop.eup %815 }
 0x3f3   : > { %v483_v55 = vmul.f32 1.1111112, %v816_v53 }
 0x3f5   : > { %v484_v56 = vmul.f32 %v814_v47, %v483_v55 }
 0x3f7   : > { %v487_v57 = vmul.f32 %v486_v54, %v484_v56 }
 0x3f9   : > { %v488_v58 = vpack.c.bf16 %v487_v57, %v487_v57 }
 0x3fb   : > { %735 = vmatmul.mubr.msk.bf16.vlgmr.msra.gmra.mrb[4].mxu1 %vm343_vm1, %v488_v58 }
 0x4ce   : > { %v532_v59 = vpop.f32.mrb[4].mxu1 }
 0x4cf   : > { %538 = vst.msk [vmem:[%s306_s26] sm:$0xff] %vm343_vm1, %v532_v59  ;;  %v736_v60 = vpop.f32.mrb[5].mxu1 }
 0x4d0   : > { %v535_v61 = vpop.f32.mrb[6].mxu1 }
 0x4d1   : > { %918 = shalt.err (!%p915_p8)
}
 0x4d2   : > { %s919_s10 = scalar_lea.hbm %s1261_s24, 128  ;;  %s923_s7 = scalar_lea.hbm %s1311_s5, 256 }
 0x4d3   : > { %p920_p10 = scmp.ne.s32.totalorder %s1261_s24, %s919_s10  ;;  %p924_p11 = scmp.lt.u32.totalorder %s1261_s24, %s1311_s5 }
 0x4d4   : > { %p925_p13 = scmp.lt.u32.totalorder %s923_s7, %s919_s10  ;;  %p927_p7 = scmp.lt.u32.totalorder %s919_s10, %s1261_s24 }
 0x4d5   : > { %p921_p0 = pnand %p920_p10, %p1115_p12 }
 0x4d6   : > { %p926_p3 = por %p925_p13, %p924_p11 }
 0x4d7   : > { %p922_p4 = pneg %p921_p0 }
 0x4d8   : > { %p928_p9 = por %p927_p7, %p926_p3 }
 0x4da   : > { %p929_p2 = pnand %p928_p9, %p922_p4 }
 0x4dc   : > { %932 = shalt.err (!%p929_p2)
}
 0x4dd   : > { %746 = dma.vmem_to_hbm [thread:$0]  (%p1115_p12), %s1263_s14, 128, %s1261_s24, %s540_s27   ;;  %v737_v62 = vpop.f32.mrb[7].mxu1 }
 0x4de PF: > { %s565_s13 = sand.u32 1, %s967_s18   ;;  %p1328_p5 = scmp.ne.s32.totalorder %s1317_s25, 0 }
 0x4df   : > { %p1329_p1 = scmp.ge.s32.totalorder %s979_s21, 2  ;;  %s566_s15 = scalar_lea.sflag [#allocation4], %s565_s13 }
 0x4e1   : > { %p760_p6 = pnand %p1329_p1, %p1328_p5 }
 0x4e3   : > { %962 = dma.done.wait (!%p760_p6), %s566_s15, 128  }
 0x4e4   : > { %964 = vsyncadd (!%p760_p6), %s566_s15, 4294967168  ;;  %p21_p8 = scmp.ge.s32.totalorder %s1080_s30, 4   ;;  %s1330_s18 = smov %s971_s19 }
 0x4e5   : > { %s1331_s19 = smov %s975_s20  ;;  %s1332_s20 = smov %s1111_s8 }
 0x4e6   : > { %s1333_s21 = smov %s1080_s30  ;;  %23 = sbr.rel (!%p21_p8) target bundleno = 9 (0x9), region = 105 }
 0x4ed   :  { %571 = vsyncpa [#allocation3], 1 }
 0x4ee   :  { %573 = vsyncpa [#allocation3 + $0x1], 1 }
 0x4ef   :  { %574 = vsyncpa [#allocation6], 1 }
 0x4f0   :  { %576 = vsyncpa [#allocation6 + $0x1], 1 }
 0x4f1   :  { %577 = vsyncpa [#allocation4], 1 }
 0x4f2   :  { %579 = vsyncpa [#allocation4 + $0x1], 1 }

</bundles_post_ra>
